<compile_context>
chip_gen: v7x
topology: tpu7x:2x2x1
jax: 0.10.0
libtpu: 0.0.40
codegen_flags: <defaults>
</compile_context>

<pallas_src>
import functools
import math

import jax
import jax.numpy as jnp
from jax import lax
from jax.experimental import pallas as pl
from jax.experimental.pallas import tpu as pltpu


# ----------------------------------------------------------------------------
# Fused kernel: QKV projection + per-head attention + output projection
# ----------------------------------------------------------------------------
def _mhd_fused_kernel(x_ref, wqkv_ref, bqkv_ref, wo_ref, bo_ref, o_ref, *,
                      num_heads, head_dim):
    f32 = jnp.float32

    wqkv = wqkv_ref[...]                        # [E, 3E] bf16
    wo = wo_ref[...]                            # [E, E]  bf16
    cdt = wqkv.dtype                            # MXU compute dtype (bf16)

    x = x_ref[0].astype(cdt)                    # [S, E]
    S = x.shape[0]
    E = num_heads * head_dim

    # --- fused input projection (1/sqrt(Hs) already folded into q columns) ---
    qkv = (jnp.dot(x, wqkv, preferred_element_type=f32)
           + bqkv_ref[...]).astype(cdt)         # [S, 3E]

    acc = jnp.zeros((S, E), dtype=f32)          # output-projection accumulator

    # --- per-head attention; output projection accumulated per head ----------
    # TODO(synk): flash-style KV tiling for very long sequences is not
    # implemented; the [S, S] score block is materialized per head.
    for h in range(num_heads):
        lo = h * head_dim
        qh = qkv[:, lo:lo + head_dim]                       # [S, Hs] bf16
        kh = qkv[:, E + lo:E + lo + head_dim]
        vh = qkv[:, 2 * E + lo:2 * E + lo + head_dim]

        # q @ k^T without an explicit transpose (contract on the head dim).
        s = lax.dot_general(qh, kh, (((1,), (1,)), ((), ())),
                            preferred_element_type=f32)     # [S, S] f32

        # numerically stable softmax in f32
        m = jnp.max(s, axis=-1, keepdims=True)
        p = jnp.exp(s - m)
        denom = jnp.sum(p, axis=-1, keepdims=True)

        oh = jnp.dot(p.astype(cdt), vh, preferred_element_type=f32)  # [S, Hs]
        oh = oh * pl.reciprocal(denom, approx=True)

        acc = acc + jnp.dot(oh.astype(cdt), wo[lo:lo + head_dim, :],
                            preferred_element_type=f32)              # [S, E]

    # TODO(synk): att_mask (additive / boolean) path is not wired in; this
    # forward corresponds to att_mask=None.
    # TODO(synk): residual / attention dropout is identity (eval mode only).
    o_ref[0] = (acc + bo_ref[...]).astype(o_ref.dtype)


# ----------------------------------------------------------------------------
# Parameter preparation (one-time, outside the hot path)
# ----------------------------------------------------------------------------
def prepare_params(params, num_heads, compute_dtype=jnp.bfloat16):
    """Fuse wq/wk/wv into one [E, 3E] matrix, fold the 1/sqrt(head_dim)
    attention scale into the q columns, and convert matmul weights to the
    MXU-native compute dtype; biases stay f32 (added after f32 accumulation)."""
    E = params["wq"].shape[0]
    assert E % num_heads == 0
    scale = 1.0 / math.sqrt(E // num_heads)

    wq = params["wq"].astype(jnp.float32) * scale
    wk = params["wk"].astype(jnp.float32)
    wv = params["wv"].astype(jnp.float32)
    bq = params["bq"].astype(jnp.float32) * scale
    bk = params["bk"].astype(jnp.float32)
    bv = params["bv"].astype(jnp.float32)

    return {
        "wqkv": jnp.concatenate([wq, wk, wv], axis=1).astype(compute_dtype),
        "bqkv": jnp.concatenate([bq, bk, bv], axis=1),
        "wo": params["wo"].astype(compute_dtype),
        "bo": params["bo"].astype(jnp.float32),
    }


# ----------------------------------------------------------------------------
# Wrapper
# ----------------------------------------------------------------------------
def multi_head_dispatch(x, prep, num_heads):
    """MultiHeadDispatch forward (self-attention, att_mask=None, eval mode)."""
    B, S, E = x.shape
    assert E % num_heads == 0
    Hs = E // num_heads

    kernel = functools.partial(_mhd_fused_kernel,
                               num_heads=num_heads, head_dim=Hs)

    # Rough VMEM budget: double-buffered x/out blocks + resident weights +
    # f32/bf16 working set (qkv + acc + one score block), with 2x headroom,
    # clamped to stay within every chip's physical VMEM (v7x: 64 MiB).
    cbytes = jnp.dtype(prep["wqkv"].dtype).itemsize
    w_bytes = 4 * E * E * cbytes + 4 * E * 4
    io_bytes = 2 * 2 * S * E * x.dtype.itemsize
    work_bytes = (3 * S * E + S * E + S * S) * 4 + 3 * S * E * cbytes
    vmem_limit = int(min(max(2 * (w_bytes + io_bytes + work_bytes), 16 * 2**20),
                         64 * 2**20))

    return pl.pallas_call(
        kernel,
        out_shape=jax.ShapeDtypeStruct((B, S, E), x.dtype),
        grid=(B,),
        in_specs=[
            pl.BlockSpec((1, S, E), lambda b: (b, 0, 0)),       # x
            pl.BlockSpec((E, 3 * E), lambda b: (0, 0)),         # wqkv
            pl.BlockSpec((1, 3 * E), lambda b: (0, 0)),         # bqkv
            pl.BlockSpec((E, E), lambda b: (0, 0)),             # wo
            pl.BlockSpec((1, E), lambda b: (0, 0)),             # bo
        ],
        out_specs=pl.BlockSpec((1, S, E), lambda b: (b, 0, 0)),
        compiler_params=pltpu.CompilerParams(
            dimension_semantics=("parallel",),
            vmem_limit_bytes=vmem_limit,
        ),
    )(x, prep["wqkv"], prep["bqkv"], prep["wo"], prep["bo"])


# ----------------------------------------------------------------------------
# Pure-JAX reference (mirrors the PyTorch forward; same bf16 matmul inputs /
# f32 accumulation as the kernel so the comparison is apples-to-apples)
# ----------------------------------------------------------------------------
def reference(x, prep, num_heads):
    B, S, E = x.shape
    Hs = E // num_heads
    cdt = prep["wqkv"].dtype
    f32 = jnp.float32

    xb = x.astype(cdt)
    qkv = (jnp.dot(xb, prep["wqkv"], preferred_element_type=f32)
           + prep["bqkv"]).astype(cdt)
    q, k, v = qkv[..., :E], qkv[..., E:2 * E], qkv[..., 2 * E:]

    def split(t):  # [B,S,E] -> [B,H,S,Hs]
        return t.reshape(B, S, num_heads, Hs).transpose(0, 2, 1, 3)

    qh, kh, vh = split(q), split(k), split(v)
    s = jnp.einsum("bhqd,bhkd->bhqk", qh, kh, preferred_element_type=f32)
    m = jnp.max(s, axis=-1, keepdims=True)
    p = jnp.exp(s - m)
    denom = jnp.sum(p, axis=-1, keepdims=True)
    yh = jnp.einsum("bhqk,bhkd->bhqd", p.astype(cdt), vh,
                    preferred_element_type=f32) / denom
    y = yh.transpose(0, 2, 1, 3).reshape(B, S, E)
    out = jnp.dot(y.astype(cdt), prep["wo"], preferred_element_type=f32) + prep["bo"]
    return out.astype(x.dtype)


# ----------------------------------------------------------------------------
if __name__ == "__main__":
    def make_inputs(key, B, S, E):
        ks = jax.random.split(key, 8)
        wscale = 1.0 / math.sqrt(E)
        x = jax.random.normal(ks[0], (B, S, E), dtype=jnp.float32)
        params = {
            # weights stored [in, out] (transpose of torch.nn.Linear layout)
            "wq": wscale * jax.random.normal(ks[1], (E, E), dtype=jnp.float32),
            "wk": wscale * jax.random.normal(ks[2], (E, E), dtype=jnp.float32),
            "wv": wscale * jax.random.normal(ks[3], (E, E), dtype=jnp.float32),
            "wo": wscale * jax.random.normal(ks[4], (E, E), dtype=jnp.float32),
            "bq": 0.1 * jax.random.normal(ks[5], (1, E), dtype=jnp.float32),
            "bk": 0.1 * jax.random.normal(ks[6], (1, E), dtype=jnp.float32),
            "bv": 0.1 * jax.random.normal(ks[7], (1, E), dtype=jnp.float32),
            # out_proj bias is constant_(0.0) in the module
            "bo": jnp.zeros((1, E), dtype=jnp.float32),
        }
        return x, params

    key = jax.random.PRNGKey(0)
    k_small, k_big = jax.random.split(key)

    # (batch, seq, dim_model, num_heads): one tiny shape, one (8,128)-aligned.
    for kk, (B, S, E, H) in ((k_small, (2, 8, 32, 4)),
                             (k_big, (2, 128, 256, 8))):
        x, params = make_inputs(kk, B, S, E)
        prep = prepare_params(params, num_heads=H)

        out = multi_head_dispatch(x, prep, num_heads=H)
        out = jax.block_until_ready(out)

        ref = reference(x, prep, num_heads=H)
        assert out.shape == (B, S, E)
        assert jnp.allclose(out, ref, atol=1e-2, rtol=1e-2), (
            f"mismatch vs reference at shape {(B, S, E, H)}: "
            f"max abs err {jnp.max(jnp.abs(out - ref))}")

    print("KERNEL_OK")
</pallas_src>

<mosaic_0001>
module attributes {stable_mosaic.version = 11 : i64} {
  func.func @_mhd_fused_kernel(%arg0: i32, %arg1: memref<1x8x32xf32, #tpu.memory_space<vmem>>, %arg2: memref<32x96xbf16, #tpu.memory_space<vmem>>, %arg3: memref<1x96xf32, #tpu.memory_space<vmem>>, %arg4: memref<32x32xbf16, #tpu.memory_space<vmem>>, %arg5: memref<1x32xf32, #tpu.memory_space<vmem>>, %arg6: memref<1x8x32xf32, #tpu.memory_space<vmem>>) attributes {dimension_semantics = [#tpu.dimension_semantics<parallel>], iteration_bounds = array<i64: 2>, scalar_prefetch = 0 : i64, scratch_operands = 0 : i64, tpu.core_type = #tpu.core_type<tc>, window_params = [{transform_indices = @transform_0, window_bounds = array<i64: 1, 8, 32>}, {pipeline_mode = #tpu.pipeline_mode<synchronous>, transform_indices = @transform_1, window_bounds = array<i64: 32, 96>}, {pipeline_mode = #tpu.pipeline_mode<synchronous>, transform_indices = @transform_2, window_bounds = array<i64: 1, 96>}, {pipeline_mode = #tpu.pipeline_mode<synchronous>, transform_indices = @transform_3, window_bounds = array<i64: 32, 32>}, {pipeline_mode = #tpu.pipeline_mode<synchronous>, transform_indices = @transform_4, window_bounds = array<i64: 1, 32>}, {transform_indices = @transform_5, window_bounds = array<i64: 1, 8, 32>}]} {
    %c0 = arith.constant 0 : index
    %c0_0 = arith.constant 0 : index
    %0 = vector.load %arg2[%c0, %c0_0] : memref<32x96xbf16, #tpu.memory_space<vmem>>, vector<32x96xbf16>
    %c0_1 = arith.constant 0 : index
    %c0_2 = arith.constant 0 : index
    %1 = vector.load %arg4[%c0_1, %c0_2] : memref<32x32xbf16, #tpu.memory_space<vmem>>, vector<32x32xbf16>
    %c0_3 = arith.constant 0 : index
    %c0_4 = arith.constant 0 : index
    %c0_5 = arith.constant 0 : index
    %2 = vector.load %arg1[%c0_3, %c0_4, %c0_5] : memref<1x8x32xf32, #tpu.memory_space<vmem>>, vector<1x8x32xf32>
    %3 = vector.shape_cast %2 : vector<1x8x32xf32> to vector<8x32xf32>
    %4 = arith.truncf %3 : vector<8x32xf32> to vector<8x32xbf16>
    %cst = arith.constant dense<0.000000e+00> : vector<8x96xf32>
    %5 = tpu.matmul %4, %0, %cst {dimension_numbers = #tpu.dot_dimension_numbers<[1], [0], [0], [1], [0, 0, 1, 1], [], []>} : vector<8x32xbf16>, vector<32x96xbf16>, vector<8x96xf32> -> vector<8x96xf32>
    %c0_6 = arith.constant 0 : index
    %c0_7 = arith.constant 0 : index
    %6 = vector.load %arg3[%c0_6, %c0_7] : memref<1x96xf32, #tpu.memory_space<vmem>>, vector<1x96xf32>
    %7 = vector.broadcast %6 : vector<1x96xf32> to vector<8x96xf32>
    %8 = arith.addf %5, %7 : vector<8x96xf32>
    %9 = arith.truncf %8 : vector<8x96xf32> to vector<8x96xbf16>
    %cst_8 = arith.constant 0.000000e+00 : f32
    %10 = vector.broadcast %cst_8 : f32 to vector<8x32xf32>
    %11 = vector.extract_strided_slice %9 {offsets = [0, 0], sizes = [8, 8], strides = [1, 1]} : vector<8x96xbf16> to vector<8x8xbf16>
    %12 = vector.extract_strided_slice %9 {offsets = [0, 32], sizes = [8, 8], strides = [1, 1]} : vector<8x96xbf16> to vector<8x8xbf16>
    %13 = vector.extract_strided_slice %9 {offsets = [0, 64], sizes = [8, 8], strides = [1, 1]} : vector<8x96xbf16> to vector<8x8xbf16>
    %cst_9 = arith.constant dense<0.000000e+00> : vector<8x8xf32>
    %14 = tpu.matmul %11, %12, %cst_9 {dimension_numbers = #tpu.dot_dimension_numbers<[1], [1], [0], [0], [0, 0, 1, 0], [], []>} : vector<8x8xbf16>, vector<8x8xbf16>, vector<8x8xf32> -> vector<8x8xf32>
    %cst_10 = arith.constant dense<0xFF800000> : vector<8xf32>
    %15 = vector.multi_reduction <maximumf>, %14, %cst_10 [1] : vector<8x8xf32> to vector<8xf32>
    %16 = vector.shape_cast %15 : vector<8xf32> to vector<8x1xf32>
    %17 = vector.broadcast %16 : vector<8x1xf32> to vector<8x8xf32>
    %18 = arith.subf %14, %17 : vector<8x8xf32>
    %19 = math.exp %18 : vector<8x8xf32>
    %cst_11 = arith.constant dense<0.000000e+00> : vector<8xf32>
    %20 = vector.multi_reduction <add>, %19, %cst_11 [1] : vector<8x8xf32> to vector<8xf32>
    %21 = vector.shape_cast %20 : vector<8xf32> to vector<8x1xf32>
    %22 = arith.truncf %19 : vector<8x8xf32> to vector<8x8xbf16>
    %cst_12 = arith.constant dense<0.000000e+00> : vector<8x8xf32>
    %23 = tpu.matmul %22, %13, %cst_12 {dimension_numbers = #tpu.dot_dimension_numbers<[1], [0], [0], [1], [0, 0, 1, 1], [], []>} : vector<8x8xbf16>, vector<8x8xbf16>, vector<8x8xf32> -> vector<8x8xf32>
    %24 = tpu.reciprocal %21 {approx = true} : vector<8x1xf32> -> vector<8x1xf32>
    %25 = vector.broadcast %24 : vector<8x1xf32> to vector<8x8xf32>
    %26 = arith.mulf %23, %25 : vector<8x8xf32>
    %27 = arith.truncf %26 : vector<8x8xf32> to vector<8x8xbf16>
    %28 = vector.extract_strided_slice %1 {offsets = [0, 0], sizes = [8, 32], strides = [1, 1]} : vector<32x32xbf16> to vector<8x32xbf16>
    %cst_13 = arith.constant dense<0.000000e+00> : vector<8x32xf32>
    %29 = tpu.matmul %27, %28, %cst_13 {dimension_numbers = #tpu.dot_dimension_numbers<[1], [0], [0], [1], [0, 0, 1, 1], [], []>} : vector<8x8xbf16>, vector<8x32xbf16>, vector<8x32xf32> -> vector<8x32xf32>
    %30 = arith.addf %10, %29 : vector<8x32xf32>
    %31 = vector.extract_strided_slice %9 {offsets = [0, 8], sizes = [8, 8], strides = [1, 1]} : vector<8x96xbf16> to vector<8x8xbf16>
    %32 = vector.extract_strided_slice %9 {offsets = [0, 40], sizes = [8, 8], strides = [1, 1]} : vector<8x96xbf16> to vector<8x8xbf16>
    %33 = vector.extract_strided_slice %9 {offsets = [0, 72], sizes = [8, 8], strides = [1, 1]} : vector<8x96xbf16> to vector<8x8xbf16>
    %cst_14 = arith.constant dense<0.000000e+00> : vector<8x8xf32>
    %34 = tpu.matmul %31, %32, %cst_14 {dimension_numbers = #tpu.dot_dimension_numbers<[1], [1], [0], [0], [0, 0, 1, 0], [], []>} : vector<8x8xbf16>, vector<8x8xbf16>, vector<8x8xf32> -> vector<8x8xf32>
    %cst_15 = arith.constant dense<0xFF800000> : vector<8xf32>
    %35 = vector.multi_reduction <maximumf>, %34, %cst_15 [1] : vector<8x8xf32> to vector<8xf32>
    %36 = vector.shape_cast %35 : vector<8xf32> to vector<8x1xf32>
    %37 = vector.broadcast %36 : vector<8x1xf32> to vector<8x8xf32>
    %38 = arith.subf %34, %37 : vector<8x8xf32>
    %39 = math.exp %38 : vector<8x8xf32>
    %cst_16 = arith.constant dense<0.000000e+00> : vector<8xf32>
    %40 = vector.multi_reduction <add>, %39, %cst_16 [1] : vector<8x8xf32> to vector<8xf32>
    %41 = vector.shape_cast %40 : vector<8xf32> to vector<8x1xf32>
    %42 = arith.truncf %39 : vector<8x8xf32> to vector<8x8xbf16>
    %cst_17 = arith.constant dense<0.000000e+00> : vector<8x8xf32>
    %43 = tpu.matmul %42, %33, %cst_17 {dimension_numbers = #tpu.dot_dimension_numbers<[1], [0], [0], [1], [0, 0, 1, 1], [], []>} : vector<8x8xbf16>, vector<8x8xbf16>, vector<8x8xf32> -> vector<8x8xf32>
    %44 = tpu.reciprocal %41 {approx = true} : vector<8x1xf32> -> vector<8x1xf32>
    %45 = vector.broadcast %44 : vector<8x1xf32> to vector<8x8xf32>
    %46 = arith.mulf %43, %45 : vector<8x8xf32>
    %47 = arith.truncf %46 : vector<8x8xf32> to vector<8x8xbf16>
    %48 = vector.extract_strided_slice %1 {offsets = [8, 0], sizes = [8, 32], strides = [1, 1]} : vector<32x32xbf16> to vector<8x32xbf16>
    %cst_18 = arith.constant dense<0.000000e+00> : vector<8x32xf32>
    %49 = tpu.matmul %47, %48, %cst_18 {dimension_numbers = #tpu.dot_dimension_numbers<[1], [0], [0], [1], [0, 0, 1, 1], [], []>} : vector<8x8xbf16>, vector<8x32xbf16>, vector<8x32xf32> -> vector<8x32xf32>
    %50 = arith.addf %30, %49 : vector<8x32xf32>
    %51 = vector.extract_strided_slice %9 {offsets = [0, 16], sizes = [8, 8], strides = [1, 1]} : vector<8x96xbf16> to vector<8x8xbf16>
    %52 = vector.extract_strided_slice %9 {offsets = [0, 48], sizes = [8, 8], strides = [1, 1]} : vector<8x96xbf16> to vector<8x8xbf16>
    %53 = vector.extract_strided_slice %9 {offsets = [0, 80], sizes = [8, 8], strides = [1, 1]} : vector<8x96xbf16> to vector<8x8xbf16>
    %cst_19 = arith.constant dense<0.000000e+00> : vector<8x8xf32>
    %54 = tpu.matmul %51, %52, %cst_19 {dimension_numbers = #tpu.dot_dimension_numbers<[1], [1], [0], [0], [0, 0, 1, 0], [], []>} : vector<8x8xbf16>, vector<8x8xbf16>, vector<8x8xf32> -> vector<8x8xf32>
    %cst_20 = arith.constant dense<0xFF800000> : vector<8xf32>
    %55 = vector.multi_reduction <maximumf>, %54, %cst_20 [1] : vector<8x8xf32> to vector<8xf32>
    %56 = vector.shape_cast %55 : vector<8xf32> to vector<8x1xf32>
    %57 = vector.broadcast %56 : vector<8x1xf32> to vector<8x8xf32>
    %58 = arith.subf %54, %57 : vector<8x8xf32>
    %59 = math.exp %58 : vector<8x8xf32>
    %cst_21 = arith.constant dense<0.000000e+00> : vector<8xf32>
    %60 = vector.multi_reduction <add>, %59, %cst_21 [1] : vector<8x8xf32> to vector<8xf32>
    %61 = vector.shape_cast %60 : vector<8xf32> to vector<8x1xf32>
    %62 = arith.truncf %59 : vector<8x8xf32> to vector<8x8xbf16>
    %cst_22 = arith.constant dense<0.000000e+00> : vector<8x8xf32>
    %63 = tpu.matmul %62, %53, %cst_22 {dimension_numbers = #tpu.dot_dimension_numbers<[1], [0], [0], [1], [0, 0, 1, 1], [], []>} : vector<8x8xbf16>, vector<8x8xbf16>, vector<8x8xf32> -> vector<8x8xf32>
    %64 = tpu.reciprocal %61 {approx = true} : vector<8x1xf32> -> vector<8x1xf32>
    %65 = vector.broadcast %64 : vector<8x1xf32> to vector<8x8xf32>
    %66 = arith.mulf %63, %65 : vector<8x8xf32>
    %67 = arith.truncf %66 : vector<8x8xf32> to vector<8x8xbf16>
    %68 = vector.extract_strided_slice %1 {offsets = [16, 0], sizes = [8, 32], strides = [1, 1]} : vector<32x32xbf16> to vector<8x32xbf16>
    %cst_23 = arith.constant dense<0.000000e+00> : vector<8x32xf32>
    %69 = tpu.matmul %67, %68, %cst_23 {dimension_numbers = #tpu.dot_dimension_numbers<[1], [0], [0], [1], [0, 0, 1, 1], [], []>} : vector<8x8xbf16>, vector<8x32xbf16>, vector<8x32xf32> -> vector<8x32xf32>
    %70 = arith.addf %50, %69 : vector<8x32xf32>
    %71 = vector.extract_strided_slice %9 {offsets = [0, 24], sizes = [8, 8], strides = [1, 1]} : vector<8x96xbf16> to vector<8x8xbf16>
    %72 = vector.extract_strided_slice %9 {offsets = [0, 56], sizes = [8, 8], strides = [1, 1]} : vector<8x96xbf16> to vector<8x8xbf16>
    %73 = vector.extract_strided_slice %9 {offsets = [0, 88], sizes = [8, 8], strides = [1, 1]} : vector<8x96xbf16> to vector<8x8xbf16>
    %cst_24 = arith.constant dense<0.000000e+00> : vector<8x8xf32>
    %74 = tpu.matmul %71, %72, %cst_24 {dimension_numbers = #tpu.dot_dimension_numbers<[1], [1], [0], [0], [0, 0, 1, 0], [], []>} : vector<8x8xbf16>, vector<8x8xbf16>, vector<8x8xf32> -> vector<8x8xf32>
    %cst_25 = arith.constant dense<0xFF800000> : vector<8xf32>
    %75 = vector.multi_reduction <maximumf>, %74, %cst_25 [1] : vector<8x8xf32> to vector<8xf32>
    %76 = vector.shape_cast %75 : vector<8xf32> to vector<8x1xf32>
    %77 = vector.broadcast %76 : vector<8x1xf32> to vector<8x8xf32>
    %78 = arith.subf %74, %77 : vector<8x8xf32>
    %79 = math.exp %78 : vector<8x8xf32>
    %cst_26 = arith.constant dense<0.000000e+00> : vector<8xf32>
    %80 = vector.multi_reduction <add>, %79, %cst_26 [1] : vector<8x8xf32> to vector<8xf32>
    %81 = vector.shape_cast %80 : vector<8xf32> to vector<8x1xf32>
    %82 = arith.truncf %79 : vector<8x8xf32> to vector<8x8xbf16>
    %cst_27 = arith.constant dense<0.000000e+00> : vector<8x8xf32>
    %83 = tpu.matmul %82, %73, %cst_27 {dimension_numbers = #tpu.dot_dimension_numbers<[1], [0], [0], [1], [0, 0, 1, 1], [], []>} : vector<8x8xbf16>, vector<8x8xbf16>, vector<8x8xf32> -> vector<8x8xf32>
    %84 = tpu.reciprocal %81 {approx = true} : vector<8x1xf32> -> vector<8x1xf32>
    %85 = vector.broadcast %84 : vector<8x1xf32> to vector<8x8xf32>
    %86 = arith.mulf %83, %85 : vector<8x8xf32>
    %87 = arith.truncf %86 : vector<8x8xf32> to vector<8x8xbf16>
    %88 = vector.extract_strided_slice %1 {offsets = [24, 0], sizes = [8, 32], strides = [1, 1]} : vector<32x32xbf16> to vector<8x32xbf16>
    %cst_28 = arith.constant dense<0.000000e+00> : vector<8x32xf32>
    %89 = tpu.matmul %87, %88, %cst_28 {dimension_numbers = #tpu.dot_dimension_numbers<[1], [0], [0], [1], [0, 0, 1, 1], [], []>} : vector<8x8xbf16>, vector<8x32xbf16>, vector<8x32xf32> -> vector<8x32xf32>
    %90 = arith.addf %70, %89 : vector<8x32xf32>
    %c0_29 = arith.constant 0 : index
    %c0_30 = arith.constant 0 : index
    %91 = vector.load %arg5[%c0_29, %c0_30] : memref<1x32xf32, #tpu.memory_space<vmem>>, vector<1x32xf32>
    %92 = vector.broadcast %91 : vector<1x32xf32> to vector<8x32xf32>
    %93 = arith.addf %90, %92 : vector<8x32xf32>
    %c0_31 = arith.constant 0 : index
    %c0_32 = arith.constant 0 : index
    %c0_33 = arith.constant 0 : index
    %94 = vector.load %arg6[%c0_31, %c0_32, %c0_33] : memref<1x8x32xf32, #tpu.memory_space<vmem>>, vector<1x8x32xf32>
    %95 = vector.shape_cast %94 : vector<1x8x32xf32> to vector<8x32xf32>
    %96 = vector.shape_cast %93 : vector<8x32xf32> to vector<1x8x32xf32>
    tpu.vector_store %arg6[%c0_31, %c0_32, %c0_33], %96 {strides = array<i32>} : memref<1x8x32xf32, #tpu.memory_space<vmem>>, vector<1x8x32xf32>,
    return
  }
  func.func @transform_0(%arg0: i32) -> (i32, i32, i32) {
    %c0_i32 = arith.constant 0 : i32
    %c0_i32_0 = arith.constant 0 : i32
    %c0_i32_1 = arith.constant 0 : i32
    return %arg0, %c0_i32, %c0_i32_0 : i32, i32, i32
  }
  func.func @transform_1(%arg0: i32) -> (i32, i32) {
    %c0_i32 = arith.constant 0 : i32
    %c0_i32_0 = arith.constant 0 : i32
    %c0_i32_1 = arith.constant 0 : i32
    return %c0_i32, %c0_i32_0 : i32, i32
  }
  func.func @transform_2(%arg0: i32) -> (i32, i32) {
    %c0_i32 = arith.constant 0 : i32
    %c0_i32_0 = arith.constant 0 : i32
    %c0_i32_1 = arith.constant 0 : i32
    return %c0_i32, %c0_i32_0 : i32, i32
  }
  func.func @transform_3(%arg0: i32) -> (i32, i32) {
    %c0_i32 = arith.constant 0 : i32
    %c0_i32_0 = arith.constant 0 : i32
    %c0_i32_1 = arith.constant 0 : i32
    return %c0_i32, %c0_i32_0 : i32, i32
  }
  func.func @transform_4(%arg0: i32) -> (i32, i32) {
    %c0_i32 = arith.constant 0 : i32
    %c0_i32_0 = arith.constant 0 : i32
    %c0_i32_1 = arith.constant 0 : i32
    return %c0_i32, %c0_i32_0 : i32, i32
  }
  func.func @transform_5(%arg0: i32) -> (i32, i32, i32) {
    %c0_i32 = arith.constant 0 : i32
    %c0_i32_0 = arith.constant 0 : i32
    %c0_i32_1 = arith.constant 0 : i32
    return %arg0, %c0_i32, %c0_i32_0 : i32, i32, i32
  }
}

</mosaic_0001>

<bundles_post_ra>
// kernel: tpu_custom_call.1
= control target key start
LH: loop header
LB: loop body
LE: loop exit
PB: predicated region body
PF: predicated region fallthrough
CT: control target
= control target key end

     0   :  { %10 = vsyncpa [#allocation3], 0  ;;  %s1864_s0 = inlined_call_operand.hbm [shape: f32[2,8,32], index: 0, kind: input, shape index: {}]   ;;  %s1865_s1 = inlined_call_operand.hbm [shape: bf16[32,96], index: 1, kind: input, shape index: {}]   ;;  %s1866_s2 = inlined_call_operand.vmem [shape: f32[1,96], index: 2, kind: input, shape index: {}]   ;;  %s1867_s3 = inlined_call_operand.hbm [shape: bf16[32,32], index: 3, kind: input, shape index: {}]   ;;  %s1868_s4 = inlined_call_operand.vmem [shape: f32[1,32], index: 4, kind: input, shape index: {}]   ;;  %s1869_s5 = inlined_call_operand.hbm [shape: f32[2,8,32], index: 5, kind: output, shape index: {}]  }
   0x1   :  { %12 = vsyncpa [#allocation3 + $0x1], 0 }
   0x2   :  { %13 = vsyncpa [#allocation6], 0 }
   0x3   :  { %14 = vsyncpa [#allocation4], 0 }
   0x4   :  { %16 = vsyncpa [#allocation4 + $0x1], 0  ;;  %s1534_s18 = smov 0   ;;  %s1536_s19 = smov 0  }
   0x5   :  { %s1538_s20 = smov 0   ;;  %s1540_s21 = smov 0  }
   0x6 LB: > { %s1555_s22 = sadd.s32 4294967295, %s1483_s21   ;;  %s1087_s23 = sadd.s32 4294967294, %s1483_s21   ;;  %s1483_s21 = sphi %s1540_s21, %s1889_s21   ;;  %s1479_s20 = sphi %s1538_s20, %s1888_s20   ;;  %s1475_s19 = sphi %s1536_s19, %s1887_s19   ;;  %s1471_s18 = sphi %s1534_s18, %s1886_s18  }
   0x7   : > { %p42_p0 = scmp.ne.s32.totalorder %s1475_s19, %s1471_s18  ;;  %p1870_p1 = scmp.eq.s32.totalorder %s1555_s22, 0 }
   0x8   : > { %p156_p3 = scmp.eq.s32.totalorder %s1087_s23, 1  ;;  %p1088_p5 = scmp.ge.s32.totalorder %s1483_s21, 1 }
   0x9   : > { %p1564_p4 = por %p1870_p1, %p42_p0  ;;  %p163_p7 = scmp.lt.s32.totalorder %s1483_s21, 3 }
   0xa   : > { %p1569_p6 = por %p156_p3, %p42_p0  ;;  %s1485_s27 = smov [#allocation5]  }
   0xb   : > { %s1873_s24 = scalar_select %p1564_p4, 1, 0 }
   0xc   : > { %s1874_s25 = scalar_select %p1569_p6, 1, 0 }
   0xd   : > { %p1574_p8 = pnand %p1088_p5, %p163_p7  ;;  %s175_s28 = sshll.u32 %s1485_s27, 4  ;;  %s1578_s28 = int_to_ptr.vmem [resolvable:$true] %s175_s28 }
   0xe   : > { %s1486_s30 = smov [#allocation7]   ;;  %s1327_s9 = scalar_lea.hbm %s1865_s1, 256 }
   0xf   : > { %p1239_p9 = pneg %p1574_p8  ;;  %s191_s6 = sshll.u32 %s1486_s30, 4  ;;  %s1589_s6 = int_to_ptr.vmem [resolvable:$true] %s191_s6 }
  0x10   : > { %p1328_p12 = scmp.ne.s32.totalorder %s1865_s1, %s1327_s9  ;;  %p1334_p5 = scmp.lt.u32.totalorder %s1327_s9, %s1865_s1 }
  0x11   : > { %p1585_p11 = pnand %p1239_p9, %p1870_p1 }
  0x13   : > { %p1329_p13 = pneg %p1585_p11 }
  0x15   : > { %p1330_p0 = pnand %p1329_p13, %p1328_p12 }
  0x17   : > { %p1331_p3 = pneg %p1330_p0 }
  0x19   : > { %p1336_p7 = pnand %p1334_p5, %p1331_p3 }
  0x1b   : > { %1339 = shalt.err (!%p1336_p7)
}
  0x1c   : > { %s1340_s14 = scalar_lea.vmem %s1578_s28, 256  ;;  %p1348_p2 = scmp.lt.s32.totalorder %s1578_s28, %s1578_s28 }
  0x1d   : > { %p1341_p9 = scmp.ne.s32.totalorder %s1578_s28, %s1340_s14  ;;  %p1349_p12 = scmp.lt.s32.totalorder %s1340_s14, %s1340_s14 }
  0x1f   : > { %p1343_p10 = pnand %p1341_p9, %p1329_p13  ;;  %p1350_p0 = por %p1349_p12, %p1348_p2 }
  0x21   : > { %p1344_p1 = pneg %p1343_p10 }
  0x23   : > { %p1351_p6 = pnand %p1350_p0, %p1344_p1 }
  0x25   : > { %1354 = shalt.err (!%p1351_p6)
}
  0x26   : > { %s1487_s15 = smov 64   ;;  %s1488_s16 = smov 4  }
  0x27   : > { %1242 = dma.hbm_to_vmem [thread:$0]  (!%p1585_p11), %s1865_s1, 256, %s1578_s28, [#allocation6], %s1487_s15, %s1487_s15, %s1488_s16  }
  0x28   : > { %s1355_s7 = scalar_lea.hbm %s1867_s3, 256 }
  0x29   : > { %p1356_p2 = scmp.ne.s32.totalorder %s1867_s3, %s1355_s7  ;;  %p1362_p10 = scmp.lt.u32.totalorder %s1355_s7, %s1867_s3 }
  0x2b   : > { %p1358_p1 = pnand %p1356_p2, %p1329_p13 }
  0x2d   : > { %p1359_p6 = pneg %p1358_p1 }
  0x2f   : > { %p1364_p3 = pnand %p1362_p10, %p1359_p6 }
  0x31   : > { %1367 = shalt.err (!%p1364_p3)
}
  0x32   : > { %s1368_s28 = scalar_lea.vmem %s1589_s6, 256  ;;  %p1376_p12 = scmp.lt.s32.totalorder %s1589_s6, %s1589_s6 }
  0x33   : > { %p1369_p5 = scmp.ne.s32.totalorder %s1589_s6, %s1368_s28  ;;  %p1377_p0 = scmp.lt.s32.totalorder %s1368_s28, %s1368_s28 }
  0x35   : > { %p1371_p7 = pnand %p1369_p5, %p1329_p13  ;;  %p1378_p2 = por %p1377_p0, %p1376_p12 }
  0x37   : > { %p1372_p9 = pneg %p1371_p7 }
  0x39   : > { %p1379_p1 = pnand %p1378_p2, %p1372_p9 }
  0x3b   : > { %1382 = shalt.err (!%p1379_p1)
}
  0x3c   : > { %1245 = dma.hbm_to_vmem [thread:$0]  (!%p1585_p11), %s1867_s3, 256, %s1589_s6, [#allocation6], %s1487_s15, %s1487_s15, %s1488_s16  }
  0x3d   : > { %s1644_s14 = sadd.s32 1, %s1483_s21   ;;  %s29_s29 = sadd.s32 1, %s1479_s20 }
  0x3e   : > { %s26_s17 = ssub.s32 %s1483_s21, %s1644_s14  ;;  %p36_p13 = scmp.ne.s32.totalorder %s1479_s20, %s1475_s19 }
  0x3f   : > { %p27_p6 = scmp.eq.s32.totalorder %s26_s17, 0  ;;  %p37_p10 = scmp.eq.s32.totalorder %s1483_s21, 0 }
  0x40   : > { %p1877_p3 = scmp.eq.s32.totalorder %s1555_s22, 1  ;;  %p1256_p7 = scmp.lt.s32.totalorder %s1483_s21, 2 }
  0x41   : > { %s1660_s27 = scalar_select %p27_p6, %s1479_s20, %s29_s29  }
  0x42   : > { %p1654_p5 = por %p1877_p3, %p36_p13  ;;  %p38_p9 = por %p37_p10, %p36_p13 }
  0x43   : > { %s208_s30 = sand.u32 1, %s1479_s20   ;;  %s1093_s6 = sshll.u32 %s1483_s21, 7 }
  0x44   : > { %s1878_s23 = scalar_select %p1654_p5, 1, 0 }
  0x45   : > { %s1092_s7 = sshll.u32 %s208_s30, 3  ;;  %s1667_s8 = scalar_lea.hbm %s1864_s0, %s1093_s6 }
  0x46   : > { %s212_s9 = scalar_lea.vmem [#allocation2], %s1092_s7  ;;  %p1671_p11 = pnand %p1256_p7, %p38_p9 }
  0x47   : > { %s219_s10 = sshll.u32 %s212_s9, 4  ;;  %s209_s28 = scalar_lea.sflag [#allocation3], %s208_s30  ;;  %s1669_s10 = int_to_ptr.vmem [resolvable:$true] %s219_s10 }
  0x48   : > { %s1383_s12 = scalar_lea.hbm %s1667_s8, 128  ;;  %p1385_p0 = pneg %p1671_p11 }
  0x49   : > { %p1384_p12 = scmp.ne.s32.totalorder %s1667_s8, %s1383_s12  ;;  %s1388_s17 = scalar_lea.hbm %s1864_s0, 256 }
  0x4a   : > { %p1389_p13 = scmp.lt.u32.totalorder %s1667_s8, %s1864_s0  ;;  %p1390_p6 = scmp.lt.u32.totalorder %s1388_s17, %s1383_s12 }
  0x4b   : > { %p1386_p2 = pnand %p1385_p0, %p1384_p12  ;;  %p1392_p3 = scmp.lt.u32.totalorder %s1383_s12, %s1667_s8 }
  0x4c   : > { %p1391_p10 = por %p1390_p6, %p1389_p13 }
  0x4d   : > { %p1387_p1 = pneg %p1386_p2 }
  0x4e   : > { %p1393_p7 = por %p1392_p3, %p1391_p10 }
  0x50   : > { %p1394_p9 = pnand %p1393_p7, %p1387_p1 }
  0x52   : > { %1397 = shalt.err (!%p1394_p9)
}
  0x53   : > { %s1398_s30 = scalar_lea.vmem %s1669_s10, 128  ;;  %s1489_s15 = smov [#allocation2]  }
  0x54   : > { %p1399_p12 = scmp.ne.s32.totalorder %s1669_s10, %s1398_s30  ;;  %s1403_s16 = sshll.u32 %s1489_s15, 4  ;;  %s1404_s16 = int_to_ptr.vmem [resolvable:$false] %s1403_s16 }
  0x55   : > { %s1405_s9 = scalar_lea.vmem %s1404_s16, 256  ;;  %p1406_p4 = scmp.lt.s32.totalorder %s1669_s10, %s1404_s16 }
  0x56   : > { %p1401_p2 = pnand %p1399_p12, %p1385_p0  ;;  %p1407_p13 = scmp.lt.s32.totalorder %s1405_s9, %s1398_s30 }
  0x58   : > { %p1402_p5 = pneg %p1401_p2  ;;  %p1408_p6 = por %p1407_p13, %p1406_p4 }
  0x5a   : > { %p1409_p10 = pnand %p1408_p6, %p1402_p5 }
  0x5c   : > { %1412 = shalt.err (!%p1409_p10)
}
  0x5d   : > { %1249 = dma.hbm_to_vmem [thread:$0]  (!%p1671_p11), %s1667_s8, 128, %s1669_s10, %s209_s28  }
  0x5e   : > { %228 = sbr.rel (%p1574_p8) target bundleno = 2256 (0x8d0), region = 40  ;;  %s1703_s12 = sand.u32 (!%p1574_p8), 1, %s1475_s19  }
  0x5f   : > { %s1095_s13 = sshll.u32 (!%p1574_p8), %s1703_s12, 3  ;;  %s231_s29 = scalar_lea.sflag (!%p1574_p8), [#allocation3], %s1703_s12 }
  0x60   : > { %s234_s17 = scalar_lea.vmem (!%p1574_p8), [#allocation2], %s1095_s13  ;;  %p1880_p4 = scmp.ne.s32.totalorder (!%p1574_p8), %s1873_s24, 0 }
  0x65   : > { %1458 = dma.done.wait (%p1880_p4), %s231_s29, 128  }
  0x66   : > { %1460 = vsyncadd (%p1880_p4), %s231_s29, 4294967168  ;;  %p1881_p5 = scmp.eq.s32.totalorder %s1555_s22, 0 }
  0x68   : > { %1462 = dma.done.wait (%p1881_p5), [#allocation6], 512   ;;  %p1882_p8 = pmov %p1881_p5 }
  0x69   : > { %v1490_v0 = vmov 0.0   ;;  %vm1491_vm0 = vmmov 0   ;;  %v1309_v1 = vld [vmem:[#allocation5] sm:$0xff]   ;;  %v1310_v2 = vld [vmem:[#allocation5 + $0x8] sm:$0xff]   ;;  %v278_v3 = vld [vmem:[%s234_s17] sm:$0xff]  ;;  %vm299_vm1 = vcmask 261120  }
  0x6a   : > { %1464 = vsyncadd (%p1882_p8), [#allocation6], 4294966784  ;;  %1147 = vmatprep.subr.bf16.mxu0 %v1490_v0  ;;  %1151 = vmatprep.mubr.msk.bf16.mxu0 %vm1491_vm0, %v1490_v0  ;;  %v279_v4 = vpack.c.bf16 %v278_v3, %v278_v3  ;;  %v1099_v5 = vld [vmem:[%s1866_s2] ss:$0 sm:$0xff]  ;;  %s1492_s8 = smov 120   ;;  %s1493_s10 = smov 96  }
  0x6b   : > { %1155 = vmatprep.subr.bf16.mxu1 %v1490_v0  ;;  %1157 = vmatprep.mubr.msk.bf16.mxu1 %vm1491_vm0, %v1490_v0  ;;  %s1494_s11 = smov 88   ;;  %vm347_vm2 = vcmask 64512   ;;  %s1495_s28 = smov 56   ;;  %vm409_vm3 = vcmask 1043456   ;;  %v274_v43 = vld [vmem:[#allocation7] sm:$0xf] }
  0x6c   : > { %1148 = vmatpush3.bf16.msra.mxu0 %v1309_v1  ;;  %s1496_s7 = smov 64   ;;  %s1497_s6 = smov 80   ;;  %v617_v44 = vsel %vm409_vm3, %v274_v43, 0  ;;  %v275_v45 = vld [vmem:[#allocation7 + $0x4] sm:$0xf] }
  0x6d   : > { %1149 = vmatprep.subr.bf16.mxu0 %v1490_v0  ;;  %s1498_s30 = smov 112   ;;  %s1499_s15 = smov 72   ;;  %v571_v46 = vsel %vm409_vm3, %v275_v45, 0 }
  0x6e   : > { %s1500_s16 = smov 48   ;;  %s1501_s9 = smov 104  }
  0x6f   : > { %s1502_s29 = smov 40   ;;  %s1117_s26 = sshll.u32 %s1555_s22, 7 }
  0x70   : > { %1150 = vmatpush3.bf16.msra.mxu0 %v1310_v2  ;;  %s985_s22 = scalar_lea.sflag [#allocation4], %s1703_s12  ;;  %p1883_p0 = scmp.ne.s32.totalorder %s1878_s23, 0 }
  0x71   : > { %1161 = vmatprep.subr.bf16.mxu0 %v1490_v0 }
  0x73   : > { %1152 = vmatmul.mubr.msk.bf16.vlgmr.msra.gmra.mrb[0].mxu0 %vm299_vm1, %v279_v4 }
  0x74   : > { %1163 = vmatprep.mubr.msk.bf16.mxu0 %vm1491_vm0, %v1490_v0 }
 0x146   : > { %v337_v6 = vpop.f32.mrb[0].mxu0 }
 0x147   : > { %v338_v7 = vadd.f32 %v1099_v5, %v337_v6  ;;  %v1153_v8 = vpop.f32.mrb[1].mxu0 }
 0x148   : > { %v340_v9 = vpop.f32.mrb[2].mxu0 }
 0x149   : > { %v1731_v10 = vpack.c.bf16 %v338_v7, %v338_v7  ;;  %v1154_v11 = vpop.f32.mrb[3].mxu0 }
 0x14b   : > { %456 = vrot.lane.b32.xlu1 %v1731_v10, %s1492_s8  ;;  %345 = vrot.lane.b32.xlu0 %v1731_v10, %s1493_s10  ;;  %s268_s8 = scalar_lea.vmem [#allocation8], %s1095_s13 }
 0x14c   : > { %s998_s10 = sshll.u32 %s268_s8, 4  ;;  %s1821_s10 = int_to_ptr.vmem [resolvable:$true] %s998_s10 }
 0x14d   : > { %s1413_s13 = scalar_lea.vmem %s1821_s10, 128 }
 0x14e   : > { %p1414_p11 = scmp.ne.s32.totalorder %s1821_s10, %s1413_s13 }
 0x14f   : > { %458 = vrot.lane.b32.xlu0 %v1731_v10, %s1494_s11 }
 0x150   : > { %p1415_p1 = pnand %p1414_p11, %p1883_p0 }
 0x152   : > { %p1416_p3 = pneg %p1415_p1 }
 0x1bd   : > { %v346_v12 = vpop.permute.xlu0 %345  ;;  %v457_v16 = vpop.permute.xlu1 %456 }
 0x1be   : > { %v352_v13 = vsel %vm347_vm2, %v346_v12, 0 }
 0x1bf   : > { %1156 = vmatpush3.bf16.xpose.msra.mxu1 %v352_v13 }
 0x1c0   : > { %1167 = vmatprep.subr.bf16.mxu1 %v1490_v0 }
 0x1c1   : > { %v459_v14 = vpop.permute.xlu0 %458 }
 0x1c2   : > { %v464_v15 = vsel %vm347_vm2, %v459_v14, 0 }
 0x1c6   : > { %1158 = vmatmul.mubr.msk.bf16.vlgmr.msra.gmra.mrb[0].mxu1 %vm347_vm2, %v1731_v10 }
 0x1c7   : > { %1168 = vmatpush3.bf16.xpose.msra.mxu1 %v464_v15  ;;  %1169 = vmatprep.mubr.msk.bf16.mxu1 %vm1491_vm0, %v1490_v0 }
 0x1c8   : > { %1179 = vmatprep.subr.bf16.mxu1 %v1490_v0 }
 0x1ce   : > { %1170 = vmatmul.mubr.msk.bf16.vlgmr.msra.gmra.mrb[4].mxu1 %vm347_vm2, %v457_v16 }
 0x1cf   : > { %1181 = vmatprep.mubr.msk.bf16.mxu1 %vm1491_vm0, %v1490_v0  ;;  %1180 = vmatpush3.bf16.msra.mxu1 %v571_v46 }
 0x1d0   : > { %1191 = vmatprep.subr.bf16.mxu1 %v1490_v0 }
 0x299   : > { %v388_v17 = vpop.f32.mrb[0].mxu1 }
 0x29a   : > { %v1159_v18 = vpop.f32.mrb[1].mxu1  ;;  %v394_v19 = vsel %vm347_vm2, %v388_v17, -inf }
 0x29b   : > { %395 = vmax.xlane.f32.xlu1 %v394_v19  ;;  %v391_v20 = vpop.f32.mrb[2].mxu1 }
 0x29c   : > { %v1160_v21 = vpop.f32.mrb[3].mxu1 }
 0x2a1   : > { %v500_v22 = vpop.f32.mrb[4].mxu1 }
 0x2a2   : > { %v1171_v23 = vpop.f32.mrb[5].mxu1  ;;  %v506_v24 = vsel %vm347_vm2, %v500_v22, -inf }
 0x2a3   : > { %507 = vmax.xlane.f32.xlu0 %v506_v24  ;;  %v503_v25 = vpop.f32.mrb[6].mxu1 }
 0x2a4   : > { %v1172_v26 = vpop.f32.mrb[7].mxu1 }
 0x2ac   : > { %516 = vrot.lane.b32.xlu1 %v1731_v10, %s1495_s28 }
 0x2b9   : > { %404 = vrot.lane.b32.xlu0 %v1731_v10, %s1496_s7  ;;  %s1819_s7 = scalar_lea.hbm %s1869_s5, %s1117_s26 }
 0x2bd   : > { %661 = vrot.lane.b32.xlu0 %v1731_v10, %s1497_s6  ;;  %s1503_s6 = smov [#allocation8]  }
 0x2c1   : > { %659 = vrot.lane.b32.xlu0 %v1731_v10, %s1498_s30  ;;  %s1417_s30 = sshll.u32 %s1503_s6, 4  ;;  %s1418_s30 = int_to_ptr.vmem [resolvable:$false] %s1417_s30 }
 0x2c2   : > { %p1420_p7 = scmp.lt.s32.totalorder %s1821_s10, %s1418_s30 }
 0x328   : > { %v396_v27 = vpop.xlane.xlu1 %395 }
 0x329   : > { %v397_v28 = vsub.f32 %v388_v17, %v396_v27 }
 0x32b   : > { %v398_v29 = vmul.f32 1.442695, %v397_v28 }
 0x32c   : > { %v517_v36 = vpop.permute.xlu1 %516 }
 0x32d   : > { %1311 = vpow2.f32 %v398_v29  ;;  %v522_v39 = vsel %vm409_vm3, %v517_v36, 0  ;;  %v276_v29 = vld [vmem:[#allocation7 + $0x8] sm:$0xf] }
 0x330   : > { %v508_v30 = vpop.xlane.xlu0 %507 }
 0x331   : > { %v509_v31 = vsub.f32 %v500_v22, %v508_v30  ;;  %v774_v30 = vsel %vm409_vm3, %v276_v29, 0 }
 0x333   : > { %v510_v32 = vmul.f32 1.442695, %v509_v31 }
 0x334   : > { %v405_v33 = vpop.permute.xlu0 %404 }
 0x335   : > { %1313 = vpow2.f32 %v510_v32  ;;  %v411_v34 = vsel %vm409_vm3, %v405_v33, 0 }
 0x336   : > { %1162 = vmatpush3.bf16.msra.mxu0 %v411_v34 }
 0x337   : > { %v1312_v35 = vpop.eup %1311  ;;  %1173 = vmatprep.subr.bf16.mxu0 %v1490_v0 }
 0x338   : > { %v400_v37 = vsel %vm347_vm2, %v1312_v35, 0.0  ;;  %v403_v38 = vpack.c.bf16 %v1312_v35, %v1312_v35  ;;  %v662_v47 = vpop.permute.xlu0 %661 }
 0x339   : > { %401 = vadd.xlane.f32.xlu0 %v400_v37  ;;  %v667_v2 = vsel %vm347_vm2, %v662_v47, 0 }
 0x33a   : > { %1164 = vmatmul.mubr.msk.bf16.vlgmr.msra.gmra.mrb[4].mxu0 %vm347_vm2, %v403_v38 }
 0x33b   : > { %1174 = vmatpush3.bf16.msra.mxu0 %v522_v39  ;;  %1175 = vmatprep.mubr.msk.bf16.mxu0 %vm1491_vm0, %v1490_v0 }
 0x33c   : > { %1185 = vmatprep.subr.bf16.mxu0 %v1490_v0  ;;  %v660_v48 = vpop.permute.xlu0 %659 }
 0x33f   : > { %v1314_v40 = vpop.eup %1313 }
 0x340   : > { %v512_v41 = vsel %vm347_vm2, %v1314_v40, 0.0  ;;  %v515_v42 = vpack.c.bf16 %v1314_v40, %v1314_v40 }
 0x341   : > { %513 = vadd.xlane.f32.xlu1 %v512_v41 }
 0x342   : > { %1176 = vmatmul.mubr.msk.bf16.vlgmr.msra.gmra.mrb[8].mxu0 %vm347_vm2, %v515_v42 }
 0x343   : > { %1187 = vmatprep.mubr.msk.bf16.mxu0 %vm1491_vm0, %v1490_v0  ;;  %1186 = vmatpush3.bf16.msra.mxu0 %v617_v44 }
 0x344   : > { %1197 = vmatprep.subr.bf16.mxu0 %v1490_v0 }
 0x34f   : > { %819 = vrot.lane.b32.xlu0 %v1731_v10, %s1499_s15  ;;  %s1419_s15 = scalar_lea.vmem %s1418_s30, 256 }
 0x350   : > { %p1421_p9 = scmp.lt.s32.totalorder %s1419_s15, %s1413_s13 }
 0x352   : > { %p1422_p12 = por %p1421_p9, %p1420_p7 }
 0x354   : > { %p1423_p2 = pnand %p1422_p12, %p1416_p3 }
 0x3c6   : > { %v402_v49 = vpop.xlane.xlu0 %401 }
 0x3c7   : > { %1315 = vrcp.f32 %v402_v49 }
 0x3ca   : > { %v820_v24 = vpop.permute.xlu0 %819 }
 0x3cb   : > { %v825_v27 = vsel %vm347_vm2, %v820_v24, 0 }
 0x3ce   : > { %v514_v50 = vpop.xlane.xlu1 %513 }
 0x3cf   : > { %1317 = vrcp.f32 %v514_v50 }
 0x3d1   : > { %v1316_v51 = vpop.eup %1315 }
 0x3d9   : > { %v1318_v58 = vpop.eup %1317 }
 0x40d   : > { %v447_v52 = vpop.f32.mrb[4].mxu0 }
 0x40e   : > { %v454_v53 = vmul.f32 %v1316_v51, %v447_v52  ;;  %v1165_v54 = vpop.f32.mrb[5].mxu0 }
 0x40f   : > { %v450_v55 = vpop.f32.mrb[6].mxu0 }
 0x410   : > { %v455_v56 = vpack.c.bf16 %v454_v53, %v454_v53  ;;  %v1166_v57 = vpop.f32.mrb[7].mxu0  ;;  %v277_v55 = vld [vmem:[#allocation7 + $0xc] sm:$0xf] }
 0x412   : > { %1188 = vmatmul.mubr.msk.bf16.vlgmr.msra.gmra.mrb[12].mxu0 %vm347_vm2, %v455_v56  ;;  %v932_v56 = vsel %vm409_vm3, %v277_v55, 0 }
 0x413   : > { %1199 = vmatprep.mubr.msk.bf16.mxu0 %vm1491_vm0, %v1490_v0 }
 0x415   : > { %v558_v59 = vpop.f32.mrb[8].mxu0 }
 0x416   : > { %v565_v60 = vmul.f32 %v1318_v58, %v558_v59  ;;  %v1177_v61 = vpop.f32.mrb[9].mxu0 }
 0x417   : > { %v561_v62 = vpop.f32.mrb[10].mxu0 }
 0x418   : > { %v566_v63 = vpack.c.bf16 %v565_v60, %v565_v60  ;;  %v1178_v1 = vpop.f32.mrb[11].mxu0 }
 0x41a   : > { %1182 = vmatmul.mubr.msk.bf16.vlgmr.msra.gmra.mrb[8].mxu1 %vm347_vm2, %v566_v63 }
 0x41b   : > { %1192 = vmatpush3.bf16.xpose.msra.mxu1 %v667_v2  ;;  %1193 = vmatprep.mubr.msk.bf16.mxu1 %vm1491_vm0, %v1490_v0 }
 0x41c   : > { %1203 = vmatprep.subr.bf16.mxu1 %v1490_v0 }
 0x422   : > { %1194 = vmatmul.mubr.msk.bf16.vlgmr.msra.gmra.mrb[12].mxu1 %vm347_vm2, %v660_v48 }
 0x423   : > { %1205 = vmatprep.mubr.msk.bf16.mxu1 %vm1491_vm0, %v1490_v0  ;;  %1204 = vmatpush3.bf16.msra.mxu1 %v774_v30 }
 0x424   : > { %1215 = vmatprep.subr.bf16.mxu1 %v1490_v0 }
 0x4e5   : > { %v653_v3 = vpop.f32.mrb[12].mxu0 }
 0x4e6   : > { %v1189_v4 = vpop.f32.mrb[13].mxu0 }
 0x4e7   : > { %v656_v5 = vpop.f32.mrb[14].mxu0 }
 0x4e8   : > { %v1190_v6 = vpop.f32.mrb[15].mxu0 }
 0x4ed   : > { %v607_v7 = vpop.f32.mrb[8].mxu1 }
 0x4ee   : > { %v1781_v8 = vadd.f32 %v653_v3, %v607_v7  ;;  %v1183_v9 = vpop.f32.mrb[9].mxu1  ;;  %v1115_v3 = vld [vmem:[%s1868_s4] ss:$0 sm:$0xff] }
 0x4ef   : > { %v610_v11 = vpop.f32.mrb[10].mxu1 }
 0x4f0   : > { %v1184_v12 = vpop.f32.mrb[11].mxu1 }
 0x4f5   : > { %v703_v13 = vpop.f32.mrb[12].mxu1 }
 0x4f6   : > { %v1195_v14 = vpop.f32.mrb[13].mxu1  ;;  %v709_v15 = vsel %vm347_vm2, %v703_v13, -inf }
 0x4f7   : > { %710 = vmax.xlane.f32.xlu1 %v709_v15  ;;  %v706_v16 = vpop.f32.mrb[14].mxu1 }
 0x4f8   : > { %v1196_v17 = vpop.f32.mrb[15].mxu1 }
 0x508   : > { %719 = vrot.lane.b32.xlu1 %v1731_v10, %s1500_s16 }
 0x50c   : > { %817 = vrot.lane.b32.xlu1 %v1731_v10, %s1501_s9 }
 0x584   : > { %v711_v18 = vpop.xlane.xlu1 %710 }
 0x585   : > { %v712_v19 = vsub.f32 %v703_v13, %v711_v18 }
 0x587   : > { %v713_v20 = vmul.f32 1.442695, %v712_v19 }
 0x588   : > { %v720_v21 = vpop.permute.xlu1 %719 }
 0x589   : > { %1319 = vpow2.f32 %v713_v20  ;;  %v725_v22 = vsel %vm409_vm3, %v720_v21, 0 }
 0x58a   : > { %1198 = vmatpush3.bf16.msra.mxu0 %v725_v22 }
 0x58b   : > { %1209 = vmatprep.subr.bf16.mxu0 %v1490_v0 }
 0x58c   : > { %v818_v28 = vpop.permute.xlu1 %817 }
 0x593   : > { %v1320_v23 = vpop.eup %1319 }
 0x594   : > { %v715_v25 = vsel %vm347_vm2, %v1320_v23, 0.0  ;;  %v718_v26 = vpack.c.bf16 %v1320_v23, %v1320_v23 }
 0x595   : > { %716 = vadd.xlane.f32.xlu1 %v715_v25 }
 0x596   : > { %1200 = vmatmul.mubr.msk.bf16.vlgmr.msra.gmra.mrb[16].mxu0 %vm347_vm2, %v718_v26 }
 0x597   : > { %1210 = vmatpush3.bf16.xpose.msra.mxu0 %v825_v27  ;;  %1211 = vmatprep.mubr.msk.bf16.mxu0 %vm1491_vm0, %v1490_v0 }
 0x598   : > { %1221 = vmatprep.subr.bf16.mxu0 %v1490_v0 }
 0x59e   : > { %1212 = vmatmul.mubr.msk.bf16.vlgmr.msra.gmra.mrb[20].mxu0 %vm347_vm2, %v818_v28 }
 0x59f   : > { %1223 = vmatprep.mubr.msk.bf16.mxu0 %vm1491_vm0, %v1490_v0  ;;  %1222 = vmatpush3.bf16.msra.mxu0 %v932_v56 }
 0x622   : > { %v717_v31 = vpop.xlane.xlu1 %716 }
 0x623   : > { %1321 = vrcp.f32 %v717_v31 }
 0x62d   : > { %v1322_v32 = vpop.eup %1321 }
 0x669   : > { %v761_v33 = vpop.f32.mrb[16].mxu0 }
 0x66a   : > { %v768_v34 = vmul.f32 %v1322_v32, %v761_v33  ;;  %v1201_v35 = vpop.f32.mrb[17].mxu0 }
 0x66b   : > { %v764_v36 = vpop.f32.mrb[18].mxu0 }
 0x66c   : > { %v769_v37 = vpack.c.bf16 %v768_v34, %v768_v34  ;;  %v1202_v38 = vpop.f32.mrb[19].mxu0 }
 0x66e   : > { %1206 = vmatmul.mubr.msk.bf16.vlgmr.msra.gmra.mrb[16].mxu1 %vm347_vm2, %v769_v37 }
 0x66f   : > { %1217 = vmatprep.mubr.msk.bf16.mxu1 %vm1491_vm0, %v1490_v0 }
 0x671   : > { %v861_v39 = vpop.f32.mrb[20].mxu0 }
 0x672   : > { %v1213_v40 = vpop.f32.mrb[21].mxu0  ;;  %v867_v41 = vsel %vm347_vm2, %v861_v39, -inf }
 0x673   : > { %868 = vmax.xlane.f32.xlu0 %v867_v41  ;;  %v864_v42 = vpop.f32.mrb[22].mxu0 }
 0x674   : > { %v1214_v43 = vpop.f32.mrb[23].mxu0 }
 0x689   : > { %877 = vrot.lane.b32.xlu0 %v1731_v10, %s1502_s29 }
 0x700   : > { %v869_v44 = vpop.xlane.xlu0 %868 }
 0x701   : > { %v870_v45 = vsub.f32 %v861_v39, %v869_v44 }
 0x703   : > { %v871_v46 = vmul.f32 1.442695, %v870_v45 }
 0x704   : > { %v878_v47 = vpop.permute.xlu0 %877 }
 0x705   : > { %1323 = vpow2.f32 %v871_v46  ;;  %v883_v48 = vsel %vm409_vm3, %v878_v47, 0 }
 0x706   : > { %1216 = vmatpush3.bf16.msra.mxu1 %v883_v48 }
 0x70f   : > { %v1324_v49 = vpop.eup %1323 }
 0x710   : > { %v873_v0 = vsel %vm347_vm2, %v1324_v49, 0.0  ;;  %v876_v50 = vpack.c.bf16 %v1324_v49, %v1324_v49 }
 0x711   : > { %874 = vadd.xlane.f32.xlu1 %v873_v0 }
 0x712   : > { %1218 = vmatmul.mubr.msk.bf16.vlgmr.msra.gmra.mrb[20].mxu1 %vm347_vm2, %v876_v50 }
 0x741   : > { %v810_v51 = vpop.f32.mrb[16].mxu1 }
 0x742   : > { %v816_v52 = vadd.f32 %v810_v51, %v1781_v8  ;;  %v1207_v53 = vpop.f32.mrb[17].mxu1 }
 0x743   : > { %v813_v10 = vpop.f32.mrb[18].mxu1 }
 0x744   : > { %v1208_v54 = vpop.f32.mrb[19].mxu1 }
 0x79e   : > { %v875_v57 = vpop.xlane.xlu1 %874 }
 0x79f   : > { %1325 = vrcp.f32 %v875_v57 }
 0x7a9   : > { %v1326_v58 = vpop.eup %1325 }
 0x7e5   : > { %v919_v59 = vpop.f32.mrb[20].mxu1 }
 0x7e6   : > { %v926_v60 = vmul.f32 %v1326_v58, %v919_v59  ;;  %v1219_v61 = vpop.f32.mrb[21].mxu1 }
 0x7e7   : > { %v922_v62 = vpop.f32.mrb[22].mxu1 }
 0x7e8   : > { %v927_v63 = vpack.c.bf16 %v926_v60, %v926_v60  ;;  %v1220_v1 = vpop.f32.mrb[23].mxu1 }
 0x7ea   : > { %1224 = vmatmul.mubr.msk.bf16.vlgmr.msra.gmra.mrb[24].mxu0 %vm347_vm2, %v927_v63 }
 0x8bd   : > { %v968_v2 = vpop.f32.mrb[24].mxu0 }
 0x8be   : > { %v974_v4 = vadd.f32 %v968_v2, %v816_v52  ;;  %v1225_v5 = vpop.f32.mrb[25].mxu0 }
 0x8bf   : > { %v971_v6 = vpop.f32.mrb[26].mxu0 }
 0x8c0   : > { %v982_v7 = vadd.f32 %v1115_v3, %v974_v4  ;;  %v1226_v8 = vpop.f32.mrb[27].mxu0 }
 0x8c2   : > { %983 = vst.msk [vmem:[%s268_s8] sm:$0xff] %vm299_vm1, %v982_v7 }
 0x8c3   : > { %1426 = shalt.err (!%p1423_p2)
}
 0x8c4   : > { %s1427_s12 = scalar_lea.hbm %s1819_s7, 128  ;;  %s1431_s29 = scalar_lea.hbm %s1869_s5, 256 }
 0x8c5   : > { %p1428_p13 = scmp.ne.s32.totalorder %s1819_s7, %s1427_s12  ;;  %p1432_p4 = scmp.lt.u32.totalorder %s1819_s7, %s1869_s5 }
 0x8c6   : > { %p1433_p5 = scmp.lt.u32.totalorder %s1431_s29, %s1427_s12  ;;  %p1435_p11 = scmp.lt.u32.totalorder %s1427_s12, %s1819_s7 }
 0x8c7   : > { %p1429_p6 = pnand %p1428_p13, %p1883_p0 }
 0x8c8   : > { %p1434_p8 = por %p1433_p5, %p1432_p4 }
 0x8c9   : > { %p1430_p10 = pneg %p1429_p6 }
 0x8ca   : > { %p1436_p1 = por %p1435_p11, %p1434_p8 }
 0x8cc   : > { %p1437_p3 = pnand %p1436_p1, %p1430_p10 }
 0x8ce   : > { %1440 = shalt.err (!%p1437_p3)
}
 0x8cf   : > { %1237 = dma.vmem_to_hbm [thread:$0]  (%p1883_p0), %s1821_s10, 128, %s1819_s7, %s985_s22  }
 0x8d0 PF: > { %s1010_s26 = sand.u32 1, %s1471_s18   ;;  %p1884_p7 = scmp.ne.s32.totalorder %s1874_s25, 0 }
 0x8d1   : > { %p1885_p9 = scmp.ge.s32.totalorder %s1483_s21, 2  ;;  %s1011_s8 = scalar_lea.sflag [#allocation4], %s1010_s26 }
 0x8d3   : > { %p1251_p12 = pnand %p1885_p9, %p1884_p7 }
 0x8d5   : > { %1466 = dma.done.wait (!%p1251_p12), %s1011_s8, 128  }
 0x8d6   : > { %1468 = vsyncadd (!%p1251_p12), %s1011_s8, 4294967168  ;;  %p19_p2 = scmp.ge.s32.totalorder %s1644_s14, 4   ;;  %s1886_s18 = smov %s1475_s19 }
 0x8d7   : > { %s1887_s19 = smov %s1479_s20  ;;  %s1888_s20 = smov %s1660_s27 }
 0x8d8   : > { %s1889_s21 = smov %s1644_s14  ;;  %21 = sbr.rel (!%p19_p2) target bundleno = 6 (0x6), region = 93 }
 0x8df   :  { %1016 = vsyncpa [#allocation3], 1 }
 0x8e0   :  { %1018 = vsyncpa [#allocation3 + $0x1], 1 }
 0x8e1   :  { %1019 = vsyncpa [#allocation6], 1 }
 0x8e2   :  { %1020 = vsyncpa [#allocation4], 1 }
 0x8e3   :  { %1022 = vsyncpa [#allocation4 + $0x1], 1 }

</bundles_post_ra>
